<compile_context>
chip_gen: v5e
topology: v5e:2x2
jax: 0.10.0
libtpu: 0.0.40
codegen_flags: <defaults>
</compile_context>

<pallas_src>
import numpy as np
import jax
import jax.numpy as jnp
from jax import lax
from jax.experimental import pallas as pl
from jax.experimental.pallas import tpu as pltpu  # noqa: F401  (TPU backend)

# ---- sizes implied by the PyTorch module -----------------------------------
VOCAB = 20                  # vocabulary_size = len(AA)  (20 amino acids)
NUM_FEATS = 6               # aa_feats.shape[1]
EMB_SIZE = 10               # emb_size argument
INP_SIZE = EMB_SIZE + NUM_FEATS          # 16
WIN_SIZE = 20               # Linear(100, vocab) forces 10*((seq-10)//2)*2 == 100 -> seq == 20
BATCH = 2
C = 10                      # conv channel count
N_CONV_K = 9                # nine Conv2d(10,10,(2,1)) layers after the first conv
N_TAPS = N_CONV_K + 2       # composed conv stack spans 11 consecutive input rows
HP = (WIN_SIZE - (1 + N_CONV_K)) // 2    # pooled height = 5
PW = 128                    # per-pool-parity lane width (vreg aligned)
KP = WIN_SIZE * VOCAB + 1   # packed one-hot K (+1 always-on bias row) = 401
assert C * HP * 2 == 100, "flatten size must equal Linear in_features (100)"


# ----------------------------------------------------------------------------
# Kernel: whole forward in one invocation (2 MXU dots + pool max + softmax).
# ----------------------------------------------------------------------------
def cnn_kernel(pidx_ref, g_ref, wfc_ref, out_ref):
    # K-packed one-hot: one broadcasted compare.  Lane k fires iff
    # pidx[b, k] == k (the wrapper pre-offsets indices by s*VOCAB and plants a
    # constant KP-1 in the last lane so the conv-bias row is always selected).
    lane = lax.broadcasted_iota(jnp.int32, pidx_ref.shape, 1)
    onehot = (pidx_ref[...] == lane).astype(jnp.float32)                 # (B, KP)

    # Embedding + Conv2d(1,10,(2,15)) + 9x Conv2d(10,10,(2,1)) + biases, every
    # output height/width/channel and BOTH pooling parities, in one dot.
    # Parity p occupies lane half [p*PW, p*PW+100); lane p*PW+127 carries a
    # constant 1.0 used below to fold in the FC bias.
    y = jnp.dot(onehot, g_ref[...], preferred_element_type=jnp.float32)  # (B, 2*PW)

    # MaxPool2d((2,1)): vreg-aligned lane-half max (no sublane shuffles).
    m = jnp.maximum(y[:, 0:PW], y[:, PW:2 * PW])                         # (B, PW)

    # Flatten + Linear(100, VOCAB) in one dot; fc bias rides on the 1.0 lane.
    logits = jnp.dot(m, wfc_ref[...], preferred_element_type=jnp.float32)  # (B, VOCAB)

    # TODO(synk): nn.Dropout(0.1) is identity at inference; not applied here.
    # Softmax over dim=1.  approx=True reciprocal does not meet the 1e-4
    # sum-to-1 budget at this size, so keep the exact path (negligible cost).
    mx = jnp.max(logits, axis=1, keepdims=True)
    e = jnp.exp(logits - mx)
    out_ref[...] = e * pl.reciprocal(jnp.sum(e, axis=1, keepdims=True), approx=False)


# ----------------------------------------------------------------------------
# Model-load-time (cached) parameter composition — host-side numpy, run ONCE.
# ----------------------------------------------------------------------------
def compose_params(params):
    """Fold embeddings, the whole conv stack and every bias into two slabs.

      g_slab  (KP, 2*PW): y[b, p*PW + h'*2C + w*C + c]
                            = sum_{d=0..10} G_d[idx[b, 2h'+p+d], w*C+c] + b_all[c]
                          realized as onehot(packed idx) @ g_slab (one dot).
                          Row KP-1 is the conv bias (always selected) and also
                          plants 1.0 at lanes p*PW+127 for the FC-bias trick.
      wfc_slab (PW, VOCAB): flattened-pool -> logits weights; row 127 = fc bias.

    The 10-layer matrix-chain composition runs in float64 on host to avoid the
    precision drift flagged for trained weights, then casts to float32.
    """
    (emb1_w, emb2_w, conv1_w, conv1_b,
     convk_w, convk_b, fc_w, fc_b) = [np.asarray(p, np.float64) for p in params]

    W1 = np.transpose(conv1_w[:, 0], (1, 2, 0))               # (2, 15, C)   [kh, kw, co]
    Wk = np.transpose(convk_w[:, :, :, :, 0], (0, 3, 2, 1))   # (9, 2, C, C) [k, kh, ci, co]
    b1 = conv1_b.reshape(1, C)

    # Compose the nine (2,1) convs: y9[h] = sum_d y0[h+d] @ M[d] + bacc.
    M = [np.eye(C)]
    bacc = np.zeros((1, C))
    for k in range(N_CONV_K):
        A0, A1 = Wk[k, 0], Wk[k, 1]
        nM = []
        for d in range(len(M) + 1):
            t = np.zeros((C, C))
            if d < len(M):
                t = t + M[d] @ A0
            if d >= 1:
                t = t + M[d - 1] @ A1
            nM.append(t)
        M = nM
        bacc = bacc @ (A0 + A1) + convk_b[k].reshape(1, C)

    # Fold in conv1: taps over the width-sliced input rows.
    N = []
    for d in range(N_TAPS):
        t = np.zeros((INP_SIZE - 1, C))
        if d < len(M):
            t = t + W1[0] @ M[d]
        if d >= 1:
            t = t + W1[1] @ M[d - 1]
        N.append(t)
    b_all = (b1 @ sum(M) + bacc).reshape(C)

    # Fold in the embedding tables; pack the two conv widths onto lanes (w*C+c).
    E = np.concatenate([emb1_w, emb2_w], axis=1)               # (VOCAB, 16)
    G = [np.concatenate([E[:, 0:INP_SIZE - 1] @ N[d],
                         E[:, 1:INP_SIZE] @ N[d]], axis=1)     # (VOCAB, 2C)
         for d in range(N_TAPS)]
    b2c = np.concatenate([b_all, b_all])                       # (2C,)

    # K-packed conv slab.  Output lane = p*PW + h'*2C + w*C + c; K row = s*VOCAB + v.
    g_slab = np.zeros((KP, 2 * PW))
    for s in range(WIN_SIZE):
        for hp in range(HP):
            for p in range(2):
                d = s - (2 * hp + p)
                if 0 <= d < N_TAPS:
                    c0 = p * PW + hp * 2 * C
                    g_slab[s * VOCAB:(s + 1) * VOCAB, c0:c0 + 2 * C] = G[d]
    for hp in range(HP):
        for p in range(2):
            c0 = p * PW + hp * 2 * C
            g_slab[KP - 1, c0:c0 + 2 * C] = b2c                # conv bias row
    g_slab[KP - 1, PW - 1] = 1.0                               # constant-1 feature lane
    g_slab[KP - 1, 2 * PW - 1] = 1.0                           # (both pool parities)

    # FC slab: PyTorch flatten order is (C, H', W) -> column c*2*HP + h'*2 + w.
    wfc = np.zeros((PW, VOCAB))
    for hp in range(HP):
        for w in range(2):
            for c in range(C):
                wfc[hp * 2 * C + w * C + c, :] = fc_w[:, c * 2 * HP + hp * 2 + w]
    wfc[PW - 1, :] = fc_b                                      # fc bias on the 1.0 lane

    return jnp.asarray(g_slab, jnp.float32), jnp.asarray(wfc, jnp.float32)


# ----------------------------------------------------------------------------
# Per-call forward (jitted).  Only the tiny int32 index im2col happens here.
# ----------------------------------------------------------------------------
def cnn_forward(x_idx, g_slab, wfc_slab):
    B, S = x_idx.shape
    # Lane-packed index slab: value at lane s*VOCAB + v equals x_idx[b,s] + s*VOCAB
    # (matches lane iota iff x_idx[b,s] == v); last lane is the always-on bias hit.
    # NOTE: out-of-range indices (>= VOCAB) would silently select a neighbouring
    # tap; inputs must be in [0, VOCAB) as nn.Embedding would require anyway.
    base = x_idx.astype(jnp.int32) + (jnp.arange(S, dtype=jnp.int32) * VOCAB)[None, :]
    pidx = jnp.repeat(base, VOCAB, axis=1)                                 # (B, S*VOCAB)
    pidx = jnp.concatenate([pidx, jnp.full((B, 1), KP - 1, jnp.int32)], axis=1)  # (B, KP)

    # Tiny footprint -> whole-array VMEM blocks, single grid-less invocation.
    return pl.pallas_call(
        cnn_kernel,
        out_shape=jax.ShapeDtypeStruct((B, VOCAB), jnp.float32),
    )(pidx, g_slab, wfc_slab)


# ----------------------------------------------------------------------------
# Pure-JAX reference mirroring the PyTorch forward (NCHW, layer by layer).
# ----------------------------------------------------------------------------
def reference(x_idx, params):
    emb1_w, emb2_w, conv1_w, conv1_b, convk_w, convk_b, fc_w, fc_b = params
    emb = jnp.concatenate([emb1_w[x_idx], emb2_w[x_idx]], axis=-1)[:, None]   # (B,1,S,F)
    dn = ('NCHW', 'OIHW', 'NCHW')
    y = lax.conv_general_dilated(emb, conv1_w, (1, 1), 'VALID', dimension_numbers=dn)
    y = y + conv1_b[None, :, None, None]
    for k in range(N_CONV_K):
        y = lax.conv_general_dilated(y, convk_w[k], (1, 1), 'VALID', dimension_numbers=dn)
        y = y + convk_b[k][None, :, None, None]
    y = jnp.maximum(y[:, :, 0::2, :], y[:, :, 1::2, :])                 # MaxPool2d((2,1))
    flat = y.reshape(y.shape[0], -1)                                    # (B, 100)
    logits = flat @ fc_w.T + fc_b                                       # Dropout: identity
    return jax.nn.softmax(logits, axis=1)


if __name__ == "__main__":
    key = jax.random.PRNGKey(0)
    ks = jax.random.split(key, 9)
    # emb1.weight: frozen min-max-scaled aa_feats -> synthetic values in [0, 1]
    emb1_w = jax.random.uniform(ks[0], (VOCAB, NUM_FEATS), jnp.float32)
    emb2_w = jax.random.normal(ks[1], (VOCAB, EMB_SIZE), jnp.float32)
    conv1_w = jax.random.normal(ks[2], (C, 1, 2, INP_SIZE - 1), jnp.float32) * 0.1
    conv1_b = jax.random.normal(ks[3], (C,), jnp.float32) * 0.1
    convk_w = jax.random.normal(ks[4], (N_CONV_K, C, C, 2, 1), jnp.float32) * 0.1
    convk_b = jax.random.normal(ks[5], (N_CONV_K, C), jnp.float32) * 0.1
    fc_w = jax.random.normal(ks[6], (VOCAB, C * HP * 2), jnp.float32) * 0.1
    fc_b = jax.random.normal(ks[7], (VOCAB,), jnp.float32) * 0.1
    params = (emb1_w, emb2_w, conv1_w, conv1_b, convk_w, convk_b, fc_w, fc_b)

    x_idx = jax.random.randint(ks[8], (BATCH, WIN_SIZE), 0, VOCAB, dtype=jnp.int32)

    # Model-load-time precompute (cached; NOT re-run inside the jitted forward).
    g_slab, wfc_slab = compose_params(params)

    fwd = jax.jit(cnn_forward)
    out = jax.block_until_ready(fwd(x_idx, g_slab, wfc_slab))

    ref = jax.block_until_ready(reference(x_idx, params))
    np.testing.assert_allclose(np.asarray(out), np.asarray(ref), rtol=1e-3, atol=1e-4)
    assert out.shape == (BATCH, VOCAB)
    assert np.allclose(np.asarray(out).sum(axis=1), 1.0, atol=1e-4)

    print("KERNEL_OK")
</pallas_src>

<mosaic_0001>
module attributes {stable_mosaic.version = 11 : i64} {
  func.func @cnn_kernel(%arg0: memref<2x401xi32, #tpu.memory_space<vmem>>, %arg1: memref<401x256xf32, #tpu.memory_space<vmem>>, %arg2: memref<128x20xf32, #tpu.memory_space<vmem>>, %arg3: memref<2x20xf32, #tpu.memory_space<vmem>>) attributes {dimension_semantics = [], scalar_prefetch = 0 : i64, scratch_operands = 0 : i64, tpu.core_type = #tpu.core_type<tc>} {
    %0 = tpu.iota {dimensions = array<i32: 1>} : vector<2x401xi32>
    %c0 = arith.constant 0 : index
    %c0_0 = arith.constant 0 : index
    %1 = vector.load %arg0[%c0, %c0_0] : memref<2x401xi32, #tpu.memory_space<vmem>>, vector<2x401xi32>
    %2 = arith.cmpi eq, %1, %0 : vector<2x401xi32>
    %3 = arith.extui %2 : vector<2x401xi1> to vector<2x401xi32>
    %4 = arith.sitofp %3 : vector<2x401xi32> to vector<2x401xf32>
    %c0_1 = arith.constant 0 : index
    %c0_2 = arith.constant 0 : index
    %5 = vector.load %arg1[%c0_1, %c0_2] : memref<401x256xf32, #tpu.memory_space<vmem>>, vector<401x256xf32>
    %cst = arith.constant dense<0.000000e+00> : vector<2x256xf32>
    %6 = tpu.matmul %4, %5, %cst {dimension_numbers = #tpu.dot_dimension_numbers<[1], [0], [0], [1], [0, 0, 1, 1], [], []>} : vector<2x401xf32>, vector<401x256xf32>, vector<2x256xf32> -> vector<2x256xf32>
    %7 = vector.extract_strided_slice %6 {offsets = [0, 0], sizes = [2, 128], strides = [1, 1]} : vector<2x256xf32> to vector<2x128xf32>
    %8 = vector.extract_strided_slice %6 {offsets = [0, 128], sizes = [2, 128], strides = [1, 1]} : vector<2x256xf32> to vector<2x128xf32>
    %9 = arith.maximumf %7, %8 : vector<2x128xf32>
    %c0_3 = arith.constant 0 : index
    %c0_4 = arith.constant 0 : index
    %10 = vector.load %arg2[%c0_3, %c0_4] : memref<128x20xf32, #tpu.memory_space<vmem>>, vector<128x20xf32>
    %cst_5 = arith.constant dense<0.000000e+00> : vector<2x20xf32>
    %11 = tpu.matmul %9, %10, %cst_5 {dimension_numbers = #tpu.dot_dimension_numbers<[1], [0], [0], [1], [0, 0, 1, 1], [], []>} : vector<2x128xf32>, vector<128x20xf32>, vector<2x20xf32> -> vector<2x20xf32>
    %cst_6 = arith.constant dense<0xFF800000> : vector<2xf32>
    %12 = vector.multi_reduction <maximumf>, %11, %cst_6 [1] : vector<2x20xf32> to vector<2xf32>
    %13 = vector.shape_cast %12 : vector<2xf32> to vector<2x1xf32>
    %14 = vector.broadcast %13 : vector<2x1xf32> to vector<2x20xf32>
    %15 = arith.subf %11, %14 : vector<2x20xf32>
    %16 = math.exp %15 : vector<2x20xf32>
    %cst_7 = arith.constant dense<0.000000e+00> : vector<2xf32>
    %17 = vector.multi_reduction <add>, %16, %cst_7 [1] : vector<2x20xf32> to vector<2xf32>
    %18 = vector.shape_cast %17 : vector<2xf32> to vector<2x1xf32>
    %19 = tpu.reciprocal %18 : vector<2x1xf32> -> vector<2x1xf32>
    %20 = vector.broadcast %19 : vector<2x1xf32> to vector<2x20xf32>
    %21 = arith.mulf %16, %20 : vector<2x20xf32>
    %c0_8 = arith.constant 0 : index
    %c0_9 = arith.constant 0 : index
    %22 = vector.load %arg3[%c0_8, %c0_9] : memref<2x20xf32, #tpu.memory_space<vmem>>, vector<2x20xf32>
    tpu.vector_store %arg3[%c0_8, %c0_9], %21 {strides = array<i32>} : memref<2x20xf32, #tpu.memory_space<vmem>>, vector<2x20xf32>,
    return
  }
}

</mosaic_0001>

<bundles_post_ra>
// kernel: cnn_forward.1
= control target key start
LH: loop header
LB: loop body
LE: loop exit
PB: predicated region body
PF: predicated region fallthrough
CT: control target
= control target key end

     0   :  { %8 = vsyncpa [#allocation3], 0  ;;  %s573_s0 = inlined_call_operand.vmem [shape: s32[2,401], index: 0, kind: input, shape index: {}]   ;;  %s574_s1 = inlined_call_operand.hbm [shape: f32[401,256], index: 1, kind: input, shape index: {}]   ;;  %s575_s2 = inlined_call_operand.vmem [shape: f32[128,20], index: 2, kind: input, shape index: {}]   ;;  %s576_s3 = inlined_call_operand.hbm [shape: f32[2,20], index: 3, kind: output, shape index: {}]  }
   0x1   :  { %9 = vsyncpa [#allocation4], 0  ;;  %s16_s14 = sshll.u32 %s574_s1, 4  ;;  %s476_s15 = smov [#allocation2]   ;;  %s17_s14 = int_to_ptr.hbm [resolvable:$true] %s16_s14 }
   0x2   :  { %s18_s16 = sshll.u32 %s476_s15, 4  ;;  %s477_s17 = smov 256   ;;  %s19_s16 = int_to_ptr.vmem [resolvable:$true] %s18_s16 }
   0x3   :  { %s478_s18 = smov 16  }
   0x4   :  { %24 = dma.hbm_to_vmem [thread:$0]  %s17_s14, 13056, %s19_s16, [#allocation3], %s477_s17, %s477_s17, %s478_s18  }
   0x5   :  { %472 = dma.done.wait [#allocation3], 13056  }
   0x6   :  { %473 = vsyncadd [#allocation3], 4294954240  ;;  %v31_v0 = vlaneseq  ;;  %v79_v1 = vld [vmem:[#allocation2 + $0xf0] sm:$0xff]  ;;  %v77_v2 = vld [vmem:[#allocation2 + $0xe0] sm:$0xff]  ;;  %vm40_vm0 = vcmask 1041408   ;;  %vm42_vm1 = vcmask 1045508  }
   0x7   :  { %v111_v3 = vld [vmem:[#allocation2 + $0x1f0] sm:$0xff]  ;;  %170 = vmatpush.msra.mxu0 %v79_v1  ;;  %v109_v4 = vld [vmem:[#allocation2 + $0x1e0] sm:$0xff]  ;;  %v80_v25 = vld [vmem:[#allocation2 + $0xf8] sm:$0xff]  ;;  %vm44_vm2 = vcmask 1043456   ;;  %v479_v56 = vmov 0.0   ;;  %vm163_vm4 = vcmask 1040384  }
   0x8   :  { %190 = vmatpush.msra.mxu1 %v111_v3  ;;  %v75_v5 = vld [vmem:[#allocation2 + $0xd0] sm:$0xff]  ;;  %v141_v8 = vld [vmem:[#allocation2 + $0x2e0] sm:$0xff]  ;;  %v32_v9 = vand.u32 127, %v31_v0  ;;  %250 = vmatpush.msra.mxu3 %v80_v25  ;;  %v78_v32 = vld [vmem:[#allocation2 + $0xe8] sm:$0xff]  ;;  %vm160_vm5 = vcmask 138240   ;;  %vm367_vm6 = vcmask 156672  }
   0x9   :  { %v107_v6 = vld [vmem:[#allocation2 + $0x1d0] sm:$0xff]  ;;  %171 = vmatpush.msra.mxu0 %v77_v2  ;;  %v73_v10 = vld [vmem:[#allocation2 + $0xc0] sm:$0xff]  ;;  %v76_v35 = vld [vmem:[#allocation2 + $0xd8] sm:$0xff]  ;;  %s400_s25 = sshll.u32 %s576_s3, 4  ;;  %s401_s25 = int_to_ptr.hbm [resolvable:$true] %s400_s25 }
   0xa   :  { %v143_v7 = vld [vmem:[#allocation2 + $0x2f0] sm:$0xff]  ;;  %191 = vmatpush.msra.mxu1 %v109_v4  ;;  %v105_v11 = vld [vmem:[#allocation2 + $0x1c0] sm:$0xff]  ;;  %v33_v16 = vadd.s32 128, %v32_v9  ;;  %v34_v17 = vadd.s32 256, %v32_v9  ;;  %v35_v18 = vadd.s32 384, %v32_v9  ;;  %251 = vmatpush.msra.mxu3 %v78_v32  ;;  %v74_v37 = vld [vmem:[#allocation2 + $0xc8] sm:$0xff] }
   0xb   :  { %210 = vmatpush.msra.mxu2 %v143_v7  ;;  %172 = vmatpush.msra.mxu0 %v75_v5  ;;  %v139_v12 = vld [vmem:[#allocation2 + $0x2d0] sm:$0xff]  ;;  %v137_v15 = vld [vmem:[#allocation2 + $0x2c0] sm:$0xff]  ;;  %v72_v43 = vld [vmem:[#allocation2 + $0xb8] sm:$0xff] }
   0xc   :  { %192 = vmatpush.msra.mxu1 %v107_v6  ;;  %v71_v13 = vld [vmem:[#allocation2 + $0xb0] sm:$0xff]  ;;  %v69_v19 = vld [vmem:[#allocation2 + $0xa0] sm:$0xff]  ;;  %v37_v26 = vrot.slane %v33_v16, 6  ;;  %v38_v27 = vrot.slane %v34_v17, 4  ;;  %v39_v28 = vrot.slane %v35_v18, 2  ;;  %252 = vmatpush.msra.mxu3 %v76_v35  ;;  %v70_v48 = vld [vmem:[#allocation2 + $0xa8] sm:$0xff] }
   0xd   :  { %211 = vmatpush.msra.mxu2 %v141_v8  ;;  %v103_v14 = vld [vmem:[#allocation2 + $0x1b0] sm:$0xff]  ;;  %173 = vmatpush.msra.mxu0 %v73_v10  ;;  %v101_v20 = vld [vmem:[#allocation2 + $0x1a0] sm:$0xff]  ;;  %v36_v51 = vld [vmem:[%s573_s0] sm:$0xff] }
   0xe   :  { %193 = vmatpush.msra.mxu1 %v105_v11  ;;  %v135_v21 = vld [vmem:[#allocation2 + $0x2b0] sm:$0xff]  ;;  %v133_v24 = vld [vmem:[#allocation2 + $0x2a0] sm:$0xff]  ;;  %v41_v38 = vsel %vm40_vm0, %v32_v9, %v37_v26  ;;  %v43_v39 = vsel %vm42_vm1, %v38_v27, %v39_v28  ;;  %253 = vmatpush.msra.mxu3 %v74_v37  ;;  %v68_v53 = vld [vmem:[#allocation2 + $0x98] sm:$0xff] }
   0xf   :  { %212 = vmatpush.msra.mxu2 %v139_v12  ;;  %174 = vmatpush.msra.mxu0 %v71_v13  ;;  %v67_v22 = vld [vmem:[#allocation2 + $0x90] sm:$0xff]  ;;  %v65_v29 = vld [vmem:[#allocation2 + $0x80] sm:$0xff]  ;;  %v45_v46 = vsel %vm44_vm2, %v41_v38, %v43_v39  ;;  %v66_v59 = vld [vmem:[#allocation2 + $0x88] sm:$0xff] }
  0x10   :  { %194 = vmatpush.msra.mxu1 %v103_v14  ;;  %v99_v23 = vld [vmem:[#allocation2 + $0x190] sm:$0xff]  ;;  %v97_v30 = vld [vmem:[#allocation2 + $0x180] sm:$0xff]  ;;  %254 = vmatpush.msra.mxu3 %v72_v43  ;;  %vm46_vm3 = vcmp.eq.s32.totalorder %v36_v51, %v45_v46  ;;  %v64_v63 = vld [vmem:[#allocation2 + $0x78] sm:$0xff] }
  0x11   :  { %213 = vmatpush.msra.mxu2 %v137_v15  ;;  %175 = vmatpush.msra.mxu0 %v69_v19  ;;  %v131_v31 = vld [vmem:[#allocation2 + $0x290] sm:$0xff]  ;;  %v129_v36 = vld [vmem:[#allocation2 + $0x280] sm:$0xff]  ;;  %v410_v57 = vsel %vm46_vm3, 1.0, %v479_v56  ;;  %v62_v3 = vld [vmem:[#allocation2 + $0x68] sm:$0xff] }
  0x12   :  { %195 = vmatpush.msra.mxu1 %v101_v20  ;;  %v63_v33 = vld [vmem:[#allocation2 + $0x70] sm:$0xff]  ;;  %v61_v40 = vld [vmem:[#allocation2 + $0x60] sm:$0xff]  ;;  %255 = vmatpush.msra.mxu3 %v70_v48  ;;  %152 = vst [vmem:[#allocation1] ss:$4 sm:$0xff] %v410_v57  ;;  %v112_v6 = vld [vmem:[#allocation2 + $0x1f8] sm:$0xff] }
  0x13   :  { %214 = vmatpush.msra.mxu2 %v135_v21  ;;  %176 = vmatpush.msra.mxu0 %v67_v22  ;;  %v95_v34 = vld [vmem:[#allocation2 + $0x170] sm:$0xff]  ;;  %v93_v41 = vld [vmem:[#allocation2 + $0x160] sm:$0xff]  ;;  %v144_v7 = vld [vmem:[#allocation2 + $0x2f8] sm:$0xff] }
  0x14   :  { %196 = vmatpush.msra.mxu1 %v99_v23  ;;  %v127_v42 = vld [vmem:[#allocation2 + $0x270] sm:$0xff]  ;;  %v125_v47 = vld [vmem:[#allocation2 + $0x260] sm:$0xff]  ;;  %256 = vmatpush.msra.mxu3 %v68_v53  ;;  %v60_v9 = vld [vmem:[#allocation2 + $0x58] sm:$0xff] }
  0x15   :  { %215 = vmatpush.msra.mxu2 %v133_v24  ;;  %177 = vmatpush.msra.mxu0 %v65_v29  ;;  %v59_v44 = vld [vmem:[#allocation2 + $0x50] sm:$0xff]  ;;  %v57_v49 = vld [vmem:[#allocation2 + $0x40] sm:$0xff]  ;;  %v110_v10 = vld [vmem:[#allocation2 + $0x1e8] sm:$0xff] }
  0x16   :  { %197 = vmatpush.msra.mxu1 %v97_v30  ;;  %v91_v45 = vld [vmem:[#allocation2 + $0x150] sm:$0xff]  ;;  %v89_v50 = vld [vmem:[#allocation2 + $0x140] sm:$0xff]  ;;  %257 = vmatpush.msra.mxu3 %v66_v59  ;;  %v142_v11 = vld [vmem:[#allocation2 + $0x2e8] sm:$0xff] }
  0x17   :  { %216 = vmatpush.msra.mxu2 %v131_v31  ;;  %178 = vmatpush.msra.mxu0 %v63_v33  ;;  %v123_v52 = vld [vmem:[#allocation2 + $0x250] sm:$0xff]  ;;  %v121_v58 = vld [vmem:[#allocation2 + $0x240] sm:$0xff]  ;;  %v58_v13 = vld [vmem:[#allocation2 + $0x48] sm:$0xff] }
  0x18   :  { %198 = vmatpush.msra.mxu1 %v95_v34  ;;  %v55_v54 = vld [vmem:[#allocation2 + $0x30] sm:$0xff]  ;;  %v53_v60 = vld [vmem:[#allocation2 + $0x20] sm:$0xff]  ;;  %258 = vmatpush.msra.mxu3 %v64_v63  ;;  %v108_v14 = vld [vmem:[#allocation2 + $0x1d8] sm:$0xff] }
  0x19   :  { %217 = vmatpush.msra.mxu2 %v129_v36  ;;  %179 = vmatpush.msra.mxu0 %v61_v40  ;;  %v87_v55 = vld [vmem:[#allocation2 + $0x130] sm:$0xff]  ;;  %v85_v61 = vld [vmem:[#allocation2 + $0x120] sm:$0xff]  ;;  %v140_v15 = vld [vmem:[#allocation2 + $0x2d8] sm:$0xff] }
  0x1a   :  { %199 = vmatpush.msra.mxu1 %v93_v41  ;;  %v119_v62 = vld [vmem:[#allocation2 + $0x230] sm:$0xff]  ;;  %v117_v2 = vld [vmem:[#allocation2 + $0x220] sm:$0xff]  ;;  %259 = vmatpush.msra.mxu3 %v62_v3  ;;  %v507_v16 = vld.sshfl [vmem:[#allocation1 + $0x10] sm:$0xff pattern:$0x73625140] }
  0x1b   :  { %218 = vmatpush.msra.mxu2 %v127_v42  ;;  %180 = vmatpush.msra.mxu0 %v59_v44  ;;  %v51_v0 = vld [vmem:[#allocation2 + $0x10] sm:$0xff]  ;;  %v49_v4 = vld [vmem:[#allocation2] sm:$0xff]  ;;  %v153_v17 = vld.sshfl [vmem:[#allocation1] sm:$0xff pattern:$0x73625140] }
  0x1c   :  { %200 = vmatpush.msra.mxu1 %v91_v45  ;;  %v83_v1 = vld [vmem:[#allocation2 + $0x110] sm:$0xff]  ;;  %v81_v5 = vld [vmem:[#allocation2 + $0x100] sm:$0xff]  ;;  %260 = vmatpush.msra.mxu3 %v60_v9  ;;  %v106_v18 = vld [vmem:[#allocation2 + $0x1c8] sm:$0xff] }
  0x1d   :  { %219 = vmatpush.msra.mxu2 %v125_v47  ;;  %181 = vmatpush.msra.mxu0 %v57_v49  ;;  %v115_v8 = vld [vmem:[#allocation2 + $0x210] sm:$0xff]  ;;  %v113_v12 = vld [vmem:[#allocation2 + $0x200] sm:$0xff]  ;;  %v138_v19 = vld [vmem:[#allocation2 + $0x2c8] sm:$0xff] }
  0x1e   :  { %201 = vmatpush.msra.mxu1 %v89_v50  ;;  %261 = vmatpush.msra.mxu3 %v58_v13  ;;  %v149_v20 = vld [vmem:[#allocation2 + $0x320] sm:$0x1]  ;;  %v104_v22 = vld [vmem:[#allocation2 + $0x1b8] sm:$0xff]  ;;  %v147_v24 = vld [vmem:[#allocation2 + $0x310] sm:$0xff] }
  0x1f   :  { %220 = vmatpush.msra.mxu2 %v123_v52  ;;  %182 = vmatpush.msra.mxu0 %v55_v54  ;;  %v509_v21 = vld.sshfl [vmem:[#allocation1 + $0x8] sm:$0xff pattern:$0x73625140]  ;;  %v136_v23 = vld [vmem:[#allocation2 + $0x2b8] sm:$0xff]  ;;  %v102_v26 = vld [vmem:[#allocation2 + $0x1a8] sm:$0xff] }
  0x20   :  { %202 = vmatpush.msra.mxu1 %v87_v55  ;;  %v56_v25 = vld [vmem:[#allocation2 + $0x38] sm:$0xff]  ;;  %v134_v27 = vld [vmem:[#allocation2 + $0x2a8] sm:$0xff]  ;;  %v145_v28 = vld [vmem:[#allocation2 + $0x300] sm:$0xff] }
  0x21   :  { %221 = vmatpush.msra.mxu2 %v121_v58  ;;  %183 = vmatpush.msra.mxu0 %v53_v60  ;;  %v54_v29 = vld [vmem:[#allocation2 + $0x28] sm:$0xff]  ;;  %v100_v30 = vld [vmem:[#allocation2 + $0x198] sm:$0xff]  ;;  %v156_v32 = vld.sshfl [vmem:[#allocation1 + $0x18] sm:$0xff pattern:$0x73625140] }
  0x22   :  { %203 = vmatpush.msra.mxu1 %v85_v61  ;;  %v132_v31 = vld [vmem:[#allocation2 + $0x298] sm:$0xff]  ;;  %262 = vmatpush.msra.mxu3 %v56_v25  ;;  %v98_v34 = vld [vmem:[#allocation2 + $0x188] sm:$0xff]  ;;  %v346_v44 = vld [vmem:[%s575_s2 + $0x78] sm:$0xff] }
  0x23   :  { %222 = vmatpush.msra.mxu2 %v119_v62  ;;  %184 = vmatpush.msra.mxu0 %v51_v0  ;;  %v52_v33 = vld [vmem:[#allocation2 + $0x18] sm:$0xff]  ;;  %v130_v35 = vld [vmem:[#allocation2 + $0x288] sm:$0xff]  ;;  %v344_v58 = vld [vmem:[%s575_s2 + $0x68] sm:$0xff] }
  0x24   :  { %204 = vmatpush.msra.mxu1 %v83_v1  ;;  %263 = vmatpush.msra.mxu3 %v54_v29  ;;  %v150_v36 = vld [vmem:[#allocation2 + $0x328] sm:$0x1]  ;;  %v96_v38 = vld [vmem:[#allocation2 + $0x178] sm:$0xff]  ;;  %v342_v60 = vld [vmem:[%s575_s2 + $0x58] sm:$0xff] }
  0x25   :  { %223 = vmatpush.msra.mxu2 %v117_v2  ;;  %185 = vmatpush.msra.mxu0 %v49_v4  ;;  %v50_v37 = vld [vmem:[#allocation2 + $0x8] sm:$0xff]  ;;  %v128_v39 = vld [vmem:[#allocation2 + $0x278] sm:$0xff]  ;;  %v340_v62 = vld [vmem:[%s575_s2 + $0x48] sm:$0xff] }
  0x26   :  { %205 = vmatpush.msra.mxu1 %v81_v5  ;;  %186 = vmatmul.f32.vlgmr.msra.gmra.mxu0 %v153_v17  ;;  %v148_v40 = vld [vmem:[#allocation2 + $0x318] sm:$0xff]  ;;  %v94_v41 = vld [vmem:[#allocation2 + $0x168] sm:$0xff]  ;;  %v338_v0 = vld [vmem:[%s575_s2 + $0x38] sm:$0xff] }
  0x27   :  { %270 = vmatpush.msrb.mxu0 %v112_v6  ;;  %224 = vmatpush.msra.mxu2 %v115_v8  ;;  %v126_v42 = vld [vmem:[#allocation2 + $0x268] sm:$0xff]  ;;  %v92_v45 = vld [vmem:[#allocation2 + $0x158] sm:$0xff]  ;;  %v336_v2 = vld [vmem:[%s575_s2 + $0x28] sm:$0xff] }
  0x28   :  { %290 = vmatpush.msrb.mxu1 %v144_v7  ;;  %264 = vmatpush.msra.mxu3 %v52_v33  ;;  %v146_v43 = vld [vmem:[#allocation2 + $0x308] sm:$0xff]  ;;  %v124_v46 = vld [vmem:[#allocation2 + $0x258] sm:$0xff]  ;;  %v334_v4 = vld [vmem:[%s575_s2 + $0x18] sm:$0xff] }
  0x29   :  { %271 = vmatpush.msrb.mxu0 %v110_v10  ;;  %225 = vmatpush.msra.mxu2 %v113_v12  ;;  %v345_v47 = vld [vmem:[%s575_s2 + $0x70] sm:$0xff]  ;;  %v88_v50 = vld [vmem:[#allocation2 + $0x138] sm:$0xff]  ;;  %v332_v6 = vld [vmem:[%s575_s2 + $0x8] sm:$0xff] }
  0x2a   :  { %291 = vmatpush.msrb.mxu1 %v142_v11  ;;  %226 = vmatmul.f32.vlgmr.msra.gmra.mxu2 %v507_v16  ;;  %v90_v48 = vld [vmem:[#allocation2 + $0x148] sm:$0xff]  ;;  %v120_v51 = vld [vmem:[#allocation2 + $0x238] sm:$0xff] }
  0x2b   :  { %272 = vmatpush.msrb.mxu0 %v108_v14  ;;  %411 = vmatpush.msk.msrb.mxu2 %vm163_vm4, %v149_v20  ;;  %v122_v49 = vld [vmem:[#allocation2 + $0x248] sm:$0xff]  ;;  %v84_v54 = vld [vmem:[#allocation2 + $0x118] sm:$0xff] }
  0x2c   :  { %292 = vmatpush.msrb.mxu1 %v140_v15  ;;  %265 = vmatpush.msra.mxu3 %v50_v37  ;;  %v86_v52 = vld [vmem:[#allocation2 + $0x128] sm:$0xff]  ;;  %v116_v55 = vld [vmem:[#allocation2 + $0x218] sm:$0xff] }
  0x2d   :  { %273 = vmatpush.msrb.mxu0 %v106_v18  ;;  %206 = vmatmul.f32.vlgmr.msra.gmra.mxu1 %v509_v21  ;;  %v118_v53 = vld [vmem:[#allocation2 + $0x228] sm:$0xff]  ;;  %v343_v59 = vld [vmem:[%s575_s2 + $0x60] sm:$0xff] }
  0x2e   :  { %293 = vmatpush.msrb.mxu1 %v138_v19  ;;  %244 = vmatpush.msrb.mxu2 %v147_v24  ;;  %v82_v56 = vld [vmem:[#allocation2 + $0x108] sm:$0xff]  ;;  %v339_v63 = vld [vmem:[%s575_s2 + $0x40] sm:$0xff] }
  0x2f   :  { %274 = vmatpush.msrb.mxu0 %v104_v22  ;;  %266 = vmatmul.f32.vlgmr.msra.gmra.mxu3 %v153_v17  ;;  %v114_v57 = vld [vmem:[#allocation2 + $0x208] sm:$0xff]  ;;  %v335_v3 = vld [vmem:[%s575_s2 + $0x20] sm:$0xff] }
  0x30   :  { %294 = vmatpush.msrb.mxu1 %v136_v23  ;;  %245 = vmatpush.msrb.mxu2 %v145_v28  ;;  %v341_v61 = vld [vmem:[%s575_s2 + $0x50] sm:$0xff]  ;;  %v331_v7 = vld [vmem:[%s575_s2] sm:$0xff] }
  0x31   :  { %275 = vmatpush.msrb.mxu0 %v102_v26  ;;  %347 = vmatpush.msrb.mxu3 %v346_v44  ;;  %v337_v1 = vld [vmem:[%s575_s2 + $0x30] sm:$0xff] }
  0x32   :  { %295 = vmatpush.msrb.mxu1 %v134_v27  ;;  %412 = vmatmul.msk.f32.vlgmr.msrb.gmra.mxu2 %vm160_vm5, %v156_v32  ;;  %v333_v5 = vld [vmem:[%s575_s2 + $0x10] sm:$0xff]  ;;  %s480_s2 = smov [#allocation5]  }
  0x33   :  { %276 = vmatpush.msrb.mxu0 %v100_v30  ;;  %413 = vmatpush.msk.msra.mxu2 %vm163_vm4, %v150_v36  ;;  %s398_s22 = sshll.u32 %s480_s2, 4  ;;  %s399_s22 = int_to_ptr.vmem [resolvable:$true] %s398_s22 }
  0x34   :  { %296 = vmatpush.msrb.mxu1 %v132_v31  ;;  %348 = vmatpush.msrb.mxu3 %v345_v47 }
  0x35   :  { %277 = vmatpush.msrb.mxu0 %v98_v34  ;;  %324 = vmatpush.msra.mxu2 %v148_v40 }
  0x36   :  { %297 = vmatpush.msrb.mxu1 %v130_v35  ;;  %349 = vmatpush.msrb.mxu3 %v344_v58 }
  0x37   :  { %278 = vmatpush.msrb.mxu0 %v96_v38  ;;  %325 = vmatpush.msra.mxu2 %v146_v43 }
  0x38   :  { %298 = vmatpush.msrb.mxu1 %v128_v39  ;;  %350 = vmatpush.msrb.mxu3 %v343_v59 }
  0x39   :  { %279 = vmatpush.msrb.mxu0 %v94_v41 }
  0x3a   :  { %299 = vmatpush.msrb.mxu1 %v126_v42  ;;  %414 = vmatmul.msk.f32.vlgmr.msra.gmra.mxu2 %vm160_vm5, %v156_v32 }
  0x3b   :  { %280 = vmatpush.msrb.mxu0 %v92_v45  ;;  %351 = vmatpush.msrb.mxu3 %v342_v60 }
  0x3c   :  { %300 = vmatpush.msrb.mxu1 %v124_v46 }
  0x3d   :  { %281 = vmatpush.msrb.mxu0 %v90_v48  ;;  %352 = vmatpush.msrb.mxu3 %v341_v61 }
  0x3e   :  { %301 = vmatpush.msrb.mxu1 %v122_v49 }
  0x3f   :  { %282 = vmatpush.msrb.mxu0 %v88_v50  ;;  %353 = vmatpush.msrb.mxu3 %v340_v62 }
  0x40   :  { %302 = vmatpush.msrb.mxu1 %v120_v51 }
  0x41   :  { %283 = vmatpush.msrb.mxu0 %v86_v52  ;;  %354 = vmatpush.msrb.mxu3 %v339_v63 }
  0x42   :  { %303 = vmatpush.msrb.mxu1 %v118_v53 }
  0x43   :  { %284 = vmatpush.msrb.mxu0 %v84_v54  ;;  %355 = vmatpush.msrb.mxu3 %v338_v0 }
  0x44   :  { %304 = vmatpush.msrb.mxu1 %v116_v55 }
  0x45   :  { %285 = vmatpush.msrb.mxu0 %v82_v56  ;;  %356 = vmatpush.msrb.mxu3 %v337_v1 }
  0x46   :  { %305 = vmatpush.msrb.mxu1 %v114_v57  ;;  %286 = vmatmul.f32.vlgmr.msrb.gmra.mxu0 %v509_v21 }
  0x47   :  { %306 = vmatmul.f32.vlgmr.msrb.gmra.mxu1 %v507_v16  ;;  %357 = vmatpush.msrb.mxu3 %v336_v2 }
  0x49   :  { %358 = vmatpush.msrb.mxu3 %v335_v3 }
  0x4b   :  { %359 = vmatpush.msrb.mxu3 %v334_v4 }
  0x4d   :  { %360 = vmatpush.msrb.mxu3 %v333_v5 }
  0x4f   :  { %361 = vmatpush.msrb.mxu3 %v332_v6 }
  0x51   :  { %362 = vmatpush.msrb.mxu3 %v331_v7 }
  0xa3   :  { %v187_v9 = vpop.f32.mrf.mxu0 }
  0xaa   :  { %v207_v10 = vpop.f32.mrf.mxu1 }
  0xab   :  { %v208_v12 = vadd.f32 %v207_v10, %v187_v9 }
  0xad   :  { %v227_v8 = vpop.f32.mrf.mxu2 }
  0xae   :  { %v228_v16 = vadd.f32 %v227_v8, %v208_v12 }
  0xb2   :  { %v267_v13 = vpop.f32.mrf.mxu3 }
  0xb5   :  { %v247_v11 = vpop.f32.mrf.mxu2 }
  0xb6   :  { %v248_v20 = vadd.f32 %v247_v11, %v228_v16 }
  0xbd   :  { %v327_v18 = vpop.f32.mrf.mxu2 }
  0xc3   :  { %v287_v14 = vpop.f32.mrf.mxu0 }
  0xc4   :  { %v307_v15 = vpop.f32.mrf.mxu1  ;;  %v288_v17 = vadd.f32 %v287_v14, %v267_v13 }
  0xc6   :  { %v308_v19 = vadd.f32 %v307_v15, %v288_v17 }
  0xc8   :  { %v328_v21 = vadd.f32 %v327_v18, %v308_v19 }
  0xca   :  { %v330_v22 = vmax.f32 %v248_v20, %v328_v21 }
  0xcc   :  { %363 = vmatmul.f32.vlgmr.msrb.gmra.mxu3 %v330_v22 }
 0x14f   :  { %v364_v23 = vpop.f32.mrf.mxu3 }
 0x150   :  { %v368_v24 = vsel %vm367_vm6, %v364_v23, -inf }
 0x151   :  { %369 = vmax.xlane.f32.xlu0 %v368_v24 }
 0x1c4   :  { %v370_v25 = vpop.xlane.xlu0 %369 }
 0x1c5   :  { %v371_v26 = vsub.f32 %v364_v23, %v370_v25 }
 0x1c7   :  { %v372_v27 = vmul.f32 1.442695, %v371_v26 }
 0x1c9   :  { %420 = vpow2.f32 %v372_v27 }
 0x1cf   :  { %v421_v28 = vpop.eup %420 }
 0x1d0   :  { %v374_v29 = vsel %vm367_vm6, %v421_v28, 0.0 }
 0x1d1   :  { %375 = vadd.xlane.f32.xlu0 %v374_v29 }
 0x244   :  { %v376_v30 = vpop.xlane.xlu0 %375 }
 0x245   :  { %422 = vrcp.f32 %v376_v30  ;;  %v388_v34 = vand.u32 2147483648, %v376_v30  ;;  %v386_v36 = vand.u32 2147483647, %v376_v30  ;;  %vm382_vm8 = vweird.f32 %v376_v30 }
 0x247   :  { %v389_v38 = vor.u32 1.1754944e-38, %v388_v34  ;;  %vm387_vm10 = vcmp.eq.f32.partialorder %v386_v36, 8.507059e+37 }
 0x24b   :  { %v423_v31 = vpop.eup %422 }
 0x24c   :  { %v378_v32 = vmul.f32 %v423_v31, %v376_v30  ;;  %vm383_vm7 = vweird.f32 %v423_v31 }
 0x24d   :  { %vm384_vm9 = vmor %vm382_vm8, %vm383_vm7 }
 0x24e   :  { %v379_v33 = vsub.f32 1.0, %v378_v32 }
 0x250   :  { %v380_v35 = vmul.f32 %v423_v31, %v379_v33 }
 0x252   :  { %v381_v37 = vadd.f32 %v423_v31, %v380_v35 }
 0x254   :  { %v385_v39 = vsel %vm384_vm9, %v423_v31, %v381_v37 }
 0x255   :  { %v390_v40 = vsel %vm387_vm10, %v389_v38, %v385_v39 }
 0x256   :  { %v391_v41 = vmul.f32 %v421_v28, %v390_v40 }
 0x258   :  { %392 = vst.msk [vmem:[#allocation5] sm:$0x3] %vm367_vm6, %v391_v41 }
 0x259   :  { %403 = dma.vmem_to_hbm [thread:$0]  %s399_s22, 32, %s401_s25, [#allocation4]  }
 0x25a   :  { %474 = dma.done.wait [#allocation4], 32  }
 0x25b   :  { %475 = vsyncadd [#allocation4], 4294967264 }
 0x25c   :  { %408 = vsyncpa [#allocation3], 1 }
 0x25d   :  { %409 = vsyncpa [#allocation4], 1 }

</bundles_post_ra>
